<compile_context>
chip_gen: v7x
topology: tpu7x:2x2x1
jax: 0.10.0
libtpu: 0.0.40
codegen_flags: <defaults>
</compile_context>

<pallas_src>
import functools

import jax
import jax.numpy as jnp
from jax import lax
from jax.experimental import pallas as pl
from jax.experimental.pallas import tpu as pltpu

LANES = 128
SUBLANES = 8
MAX_TILE_ROWS = 1024   # 1024 x 128 f32 = 512 KiB / input / pipeline buffer
NUM_SHARDS = 2         # parallel grid axis (uses both TensorCores on v7x)


def _charbonnier_partial_kernel(x_ref, y_ref, out_ref, *, eps, total_rows,
                                tile_rows, steps_per_shard):
    s = pl.program_id(0)   # shard index      ("parallel")
    j = pl.program_id(1)   # reduction step   ("arbitrary")

    @pl.when(j == 0)
    def _():
        out_ref[...] = jnp.zeros_like(out_ref)

    diff = x_ref[...].astype(jnp.float32) - y_ref[...].astype(jnp.float32)
    val = jnp.sqrt(diff * diff + eps)

    # Mask rows that fall outside the real array (ragged last block, or the
    # clamped/duplicated blocks of a shard that ran out of work).  All values
    # here are compile-time Python ints or program_ids -> no captured consts.
    row0 = (s * steps_per_shard + j) * tile_rows
    row = row0 + lax.broadcasted_iota(jnp.int32, (tile_rows, LANES), 0)
    val = jnp.where(row < total_rows, val, 0.0)

    # vreg-shaped accumulation: (tile_rows/8, 8, 128) summed over axis 0 is a
    # chain of plain VPU vector adds -- no per-step cross-lane reduce.
    out_ref[...] += jnp.sum(
        val.reshape(tile_rows // SUBLANES, SUBLANES, LANES), axis=0)


def charbonnier_loss(x, y, eps=1e-6):
    assert x.shape == y.shape
    eps_f = float(eps)
    n = x.size

    xf = x.reshape(-1)
    yf = y.reshape(-1)

    rows = n // LANES
    n_main = rows * LANES

    total = jnp.float32(0.0)

    if rows >= SUBLANES:
        # No-op slice when n % 128 == 0 (the common case); otherwise only the
        # <128-element tail is excluded and handled below in plain jnp.
        x2d = xf[:n_main].reshape(rows, LANES)
        y2d = yf[:n_main].reshape(rows, LANES)

        tile_rows = min(MAX_TILE_ROWS, (rows // SUBLANES) * SUBLANES)
        steps = (rows + tile_rows - 1) // tile_rows
        steps_per_shard = (steps + NUM_SHARDS - 1) // NUM_SHARDS
        max_block = steps - 1

        def in_map(s, j):
            # Clamp so logical steps past the end re-read a valid block; their
            # contribution is zeroed by the in-kernel row mask.
            return (jnp.minimum(s * steps_per_shard + j, max_block), 0)

        kernel = functools.partial(
            _charbonnier_partial_kernel,
            eps=eps_f,
            total_rows=rows,
            tile_rows=tile_rows,
            steps_per_shard=steps_per_shard,
        )

        partials = pl.pallas_call(
            kernel,
            out_shape=jax.ShapeDtypeStruct(
                (NUM_SHARDS, SUBLANES, LANES), jnp.float32),
            grid_spec=pltpu.PrefetchScalarGridSpec(
                num_scalar_prefetch=0,
                grid=(NUM_SHARDS, steps_per_shard),
                in_specs=[
                    pl.BlockSpec((tile_rows, LANES), in_map),
                    pl.BlockSpec((tile_rows, LANES), in_map),
                ],
                out_specs=pl.BlockSpec(
                    (None, SUBLANES, LANES), lambda s, j: (s, 0, 0)),
            ),
            compiler_params=pltpu.CompilerParams(
                dimension_semantics=("parallel", "arbitrary")),
        )(x2d, y2d)

        total = total + jnp.sum(partials)
        tail_start = n_main
    else:
        tail_start = 0

    if tail_start < n:
        # Tiny remainder (< 128 elements, or the whole thing if n < 1024).
        dt = xf[tail_start:].astype(jnp.float32) - \
             yf[tail_start:].astype(jnp.float32)
        total = total + jnp.sum(jnp.sqrt(dt * dt + eps_f))

    return total / jnp.float32(n)


def charbonnier_loss_ref(x, y, eps=1e-6):
    diff = x.astype(jnp.float32) - y.astype(jnp.float32)
    return jnp.mean(jnp.sqrt(diff * diff + eps))


if __name__ == "__main__":
    key = jax.random.PRNGKey(0)
    kx, ky = jax.random.split(key)
    # NCHW, same as the PyTorch module's expected inputs.
    x = jax.random.normal(kx, (2, 4, 16, 16), dtype=jnp.float32)
    y = jax.random.normal(ky, (2, 4, 16, 16), dtype=jnp.float32)

    loss = charbonnier_loss(x, y)
    jax.block_until_ready(loss)

    ref = charbonnier_loss_ref(x, y)
    assert jnp.allclose(loss, ref, rtol=1e-5, atol=1e-6), (loss, ref)
    print("KERNEL_OK")
</pallas_src>

<mosaic_0001>
module attributes {stable_mosaic.version = 11 : i64} {
  func.func @_charbonnier_partial_kernel(%arg0: i32, %arg1: i32, %arg2: memref<16x128xf32, #tpu.memory_space<vmem>>, %arg3: memref<16x128xf32, #tpu.memory_space<vmem>>, %arg4: memref<1x8x128xf32, #tpu.memory_space<vmem>>) attributes {dimension_semantics = [#tpu.dimension_semantics<parallel>, #tpu.dimension_semantics<arbitrary>], iteration_bounds = array<i64: 2, 1>, scalar_prefetch = 0 : i64, scratch_operands = 0 : i64, tpu.core_type = #tpu.core_type<tc>, window_params = [{transform_indices = @transform_0, window_bounds = array<i64: 16, 128>}, {transform_indices = @transform_1, window_bounds = array<i64: 16, 128>}, {transform_indices = @transform_2, window_bounds = array<i64: 1, 8, 128>}]} {
    %c0_i32 = arith.constant 0 : i32
    %0 = arith.cmpi eq, %arg1, %c0_i32 : i32
    %1 = arith.extui %0 : i1 to i32
    %c0_i32_0 = arith.constant 0 : i32
    %2 = arith.cmpi ne, %1, %c0_i32_0 : i32
    scf.if %2 {
      %cst_13 = arith.constant 0.000000e+00 : f32
      %28 = vector.broadcast %cst_13 : f32 to vector<8x128xf32>
      %c0_14 = arith.constant 0 : index
      %c0_15 = arith.constant 0 : index
      %c0_16 = arith.constant 0 : index
      %29 = vector.load %arg4[%c0_14, %c0_15, %c0_16] : memref<1x8x128xf32, #tpu.memory_space<vmem>>, vector<1x8x128xf32>
      %30 = vector.shape_cast %29 : vector<1x8x128xf32> to vector<8x128xf32>
      %31 = vector.shape_cast %28 : vector<8x128xf32> to vector<1x8x128xf32>
      tpu.vector_store %arg4[%c0_14, %c0_15, %c0_16], %31 {strides = array<i32>} : memref<1x8x128xf32, #tpu.memory_space<vmem>>, vector<1x8x128xf32>,
    } else {
    }
    %c0 = arith.constant 0 : index
    %c0_1 = arith.constant 0 : index
    %3 = vector.load %arg2[%c0, %c0_1] : memref<16x128xf32, #tpu.memory_space<vmem>>, vector<16x128xf32>
    %c0_2 = arith.constant 0 : index
    %c0_3 = arith.constant 0 : index
    %4 = vector.load %arg3[%c0_2, %c0_3] : memref<16x128xf32, #tpu.memory_space<vmem>>, vector<16x128xf32>
    %5 = arith.subf %3, %4 : vector<16x128xf32>
    %6 = arith.mulf %5, %5 : vector<16x128xf32>
    %cst = arith.constant 9.99999997E-7 : f32
    %7 = vector.broadcast %cst : f32 to vector<16x128xf32>
    %8 = arith.addf %6, %7 : vector<16x128xf32>
    %9 = math.sqrt %8 : vector<16x128xf32>
    %c1_i32 = arith.constant 1 : i32
    %10 = arith.muli %arg0, %c1_i32 : i32
    %11 = arith.addi %10, %arg1 : i32
    %c16_i32 = arith.constant 16 : i32
    %12 = arith.muli %11, %c16_i32 : i32
    %13 = tpu.iota {dimensions = array<i32: 0>} : vector<16x128xi32>
    %14 = vector.broadcast %12 : i32 to vector<16x128xi32>
    %15 = arith.addi %14, %13 : vector<16x128xi32>
    %c16_i32_4 = arith.constant 16 : i32
    %16 = vector.broadcast %c16_i32_4 : i32 to vector<16x128xi32>
    %17 = arith.cmpi slt, %15, %16 : vector<16x128xi32>
    %cst_5 = arith.constant 0.000000e+00 : f32
    %18 = vector.broadcast %cst_5 : f32 to vector<16x128xf32>
    %19 = arith.select %17, %9, %18 : vector<16x128xi1>, vector<16x128xf32>
    %c0_6 = arith.constant 0 : index
    %c0_7 = arith.constant 0 : index
    %c0_8 = arith.constant 0 : index
    %20 = vector.load %arg4[%c0_6, %c0_7, %c0_8] : memref<1x8x128xf32, #tpu.memory_space<vmem>>, vector<1x8x128xf32>
    %21 = vector.shape_cast %20 : vector<1x8x128xf32> to vector<8x128xf32>
    %22 = vector.shape_cast %19 : vector<16x128xf32> to vector<2x8x128xf32>
    %cst_9 = arith.constant dense<0.000000e+00> : vector<8x128xf32>
    %23 = vector.multi_reduction <add>, %22, %cst_9 [0] : vector<2x8x128xf32> to vector<8x128xf32>
    %24 = arith.addf %21, %23 : vector<8x128xf32>
    %c0_10 = arith.constant 0 : index
    %c0_11 = arith.constant 0 : index
    %c0_12 = arith.constant 0 : index
    %25 = vector.load %arg4[%c0_10, %c0_11, %c0_12] : memref<1x8x128xf32, #tpu.memory_space<vmem>>, vector<1x8x128xf32>
    %26 = vector.shape_cast %25 : vector<1x8x128xf32> to vector<8x128xf32>
    %27 = vector.shape_cast %24 : vector<8x128xf32> to vector<1x8x128xf32>
    tpu.vector_store %arg4[%c0_10, %c0_11, %c0_12], %27 {strides = array<i32>} : memref<1x8x128xf32, #tpu.memory_space<vmem>>, vector<1x8x128xf32>,
    return
  }
  func.func @transform_0(%arg0: i32, %arg1: i32) -> (i32, i32) {
    %c1_i32 = arith.constant 1 : i32
    %0 = arith.muli %arg0, %c1_i32 : i32
    %1 = arith.addi %0, %arg1 : i32
    %c0_i32 = arith.constant 0 : i32
    %2 = arith.minsi %1, %c0_i32 : i32
    %c0_i32_0 = arith.constant 0 : i32
    %c0_i32_1 = arith.constant 0 : i32
    return %2, %c0_i32_0 : i32, i32
  }
  func.func @transform_1(%arg0: i32, %arg1: i32) -> (i32, i32) {
    %c1_i32 = arith.constant 1 : i32
    %0 = arith.muli %arg0, %c1_i32 : i32
    %1 = arith.addi %0, %arg1 : i32
    %c0_i32 = arith.constant 0 : i32
    %2 = arith.minsi %1, %c0_i32 : i32
    %c0_i32_0 = arith.constant 0 : i32
    %c0_i32_1 = arith.constant 0 : i32
    return %2, %c0_i32_0 : i32, i32
  }
  func.func @transform_2(%arg0: i32, %arg1: i32) -> (i32, i32, i32) {
    %c0_i32 = arith.constant 0 : i32
    %c0_i32_0 = arith.constant 0 : i32
    %c0_i32_1 = arith.constant 0 : i32
    return %arg0, %c0_i32, %c0_i32_0 : i32, i32, i32
  }
}

</mosaic_0001>

<bundles_post_ra>
// kernel: tpu_custom_call.1
= control target key start
LH: loop header
LB: loop body
LE: loop exit
PB: predicated region body
PF: predicated region fallthrough
CT: control target
= control target key end

     0   :  { %7 = vsyncpa [#allocation3], 0  ;;  %s912_s0 = inlined_call_operand.hbm [shape: f32[16,128], index: 0, kind: input, shape index: {}]   ;;  %s913_s1 = inlined_call_operand.hbm [shape: f32[16,128], index: 1, kind: input, shape index: {}]   ;;  %s914_s2 = inlined_call_operand.hbm [shape: f32[2,8,128], index: 2, kind: output, shape index: {}]  }
   0x1   :  { %9 = vsyncpa [#allocation3 + $0x1], 0 }
   0x2   :  { %10 = vsyncpa [#allocation6], 0 }
   0x3   :  { %12 = vsyncpa [#allocation6 + $0x1], 0 }
   0x4   :  { %13 = vsyncpa [#allocation4], 0 }
   0x5   :  { %15 = vsyncpa [#allocation4 + $0x1], 0  ;;  %s708_s9 = smov 0   ;;  %s710_s10 = smov 0  }
   0x6   :  { %s712_s11 = smov 0   ;;  %s714_s12 = smov 0  }
   0x7   :  { %s716_s13 = smov 0   ;;  %s718_s14 = smov 0  }
   0x8   :  { %s720_s15 = smov 0   ;;  %s722_s16 = smov 0  }
   0x9 LB: > { %s400_s17 = sadd.s32 4294967295, %s686_s16   ;;  %s401_s18 = sadd.s32 4294967294, %s686_s16   ;;  %s686_s16 = sphi %s722_s16, %s21_s16   ;;  %s682_s15 = sphi %s720_s15, %s933_s15   ;;  %s678_s14 = sphi %s718_s14, %s932_s14   ;;  %s674_s13 = sphi %s716_s13, %s902_s13   ;;  %s670_s12 = sphi %s714_s12, %s931_s12   ;;  %s666_s11 = sphi %s712_s11, %s930_s11   ;;  %s662_s10 = sphi %s710_s10, %s929_s10   ;;  %s658_s9 = sphi %s708_s9, %s928_s9  }
   0xa   : > { %s33_s19 = sadd.s32 1, %s682_s15  ;;  %p655_p1 = scmp.ne.s32.totalorder %s674_s13, 0 }
   0xb   : > { %p35_p0 = scmp.ge.s32.totalorder %s33_s19, 2  ;;  %p54_p2 = scmp.eq.s32.totalorder %s686_s16, 0 }
   0xc   : > { %p59_p3 = scmp.ne.s32.totalorder %s674_s13, %s670_s12  ;;  %p60_p5 = scmp.eq.s32.totalorder %s400_s17, 0 }
   0xd   : > { %s935_s19 = smov (%p35_p0, %s33_s19), 0  ;;  %p754_p4 = por %p655_p1, %p54_p2 }
   0xe   : > { %p758_p6 = por %p60_p5, %p59_p3  ;;  %s101_s22 = ssub.s32 %s682_s15, %s935_s19 }
   0xf   : > { %p102_p7 = scmp.eq.s32.totalorder %s101_s22, 0  ;;  %s104_s23 = sadd.s32 1, %s666_s11 }
  0x10   : > { %s918_s21 = scalar_select %p758_p6, 1, 0 }
  0x11   : > { %s766_s24 = scalar_select %p102_p7, %s666_s11, %s104_s23  }
  0x12   : > { %p114_p8 = scmp.ne.s32.totalorder %s666_s11, %s662_s10  ;;  %p115_p9 = scmp.eq.s32.totalorder %s400_s17, 1 }
  0x13   : > { %p120_p10 = scmp.ne.s32.totalorder %s662_s10, %s658_s9  ;;  %p121_p11 = scmp.eq.s32.totalorder %s401_s18, 1 }
  0x14   : > { %p772_p12 = por %p115_p9, %p114_p8  ;;  %p438_p1 = scmp.lt.s32.totalorder %s686_s16, 2 }
  0x15   : > { %p777_p0 = por %p121_p11, %p120_p10  ;;  %s688_s27 = smov [#allocation2]  }
  0x16   : > { %s919_s25 = scalar_select %p772_p12, 1, 0 }
  0x17   : > { %s920_s26 = scalar_select %p777_p0, 1, 0 }
  0x18   : > { %s155_s28 = sshll.u32 %s688_s27, 4  ;;  %p784_p2 = pnand %p438_p1, %p754_p4  ;;  %s156_s28 = int_to_ptr.vmem [resolvable:$true] %s155_s28 }
  0x19   : > { %s519_s4 = scalar_lea.hbm %s912_s0, 256 }
  0x1a   : > { %p520_p3 = scmp.ne.s32.totalorder %s912_s0, %s519_s4  ;;  %p521_p5 = pneg %p784_p2 }
  0x1b   : > { %p526_p8 = scmp.lt.u32.totalorder %s519_s4, %s519_s4  ;;  %p528_p9 = scmp.lt.u32.totalorder %s519_s4, %s912_s0 }
  0x1c   : > { %p522_p7 = pnand %p521_p5, %p520_p3 }
  0x1d   : > { %p529_p10 = por %p528_p9, %p526_p8 }
  0x1e   : > { %p523_p4 = pneg %p522_p7 }
  0x20   : > { %p530_p11 = pnand %p529_p10, %p523_p4 }
  0x22   : > { %533 = shalt.err (!%p530_p11)
}
  0x23   : > { %s534_s12 = scalar_lea.vmem %s156_s28, 256  ;;  %s541_s17 = scalar_lea.vmem %s156_s28, 512 }
  0x24   : > { %p535_p1 = scmp.ne.s32.totalorder %s156_s28, %s534_s12  ;;  %p542_p12 = scmp.lt.s32.totalorder %s156_s28, %s156_s28 }
  0x25   : > { %p543_p6 = scmp.lt.s32.totalorder %s541_s17, %s534_s12 }
  0x26   : > { %p537_p13 = pnand %p535_p1, %p521_p5 }
  0x27   : > { %p544_p3 = por %p543_p6, %p542_p12 }
  0x28   : > { %p538_p0 = pneg %p537_p13 }
  0x2a   : > { %p545_p7 = pnand %p544_p3, %p538_p0 }
  0x2c   : > { %548 = shalt.err (!%p545_p7)
}
  0x2d   : > { %s689_s18 = smov 128   ;;  %s690_s20 = smov 8  }
  0x2e   : > { %430 = dma.hbm_to_vmem [thread:$0]  (!%p784_p2), %s912_s0, 256, %s156_s28, [#allocation3], %s689_s18, %s689_s18, %s690_s20  }
  0x2f   : > { %p410_p13 = scmp.ge.s32.totalorder %s686_s16, 1  ;;  %p187_p4 = scmp.lt.s32.totalorder %s686_s16, 3 }
  0x30   : > { %s691_s30 = smov [#allocation5]   ;;  %s549_s6 = scalar_lea.hbm %s913_s1, 256 }
  0x31   : > { %p815_p8 = pnand %p410_p13, %p187_p4  ;;  %s179_s3 = sshll.u32 %s691_s30, 4  ;;  %s180_s3 = int_to_ptr.vmem [resolvable:$true] %s179_s3 }
  0x32   : > { %p550_p6 = scmp.ne.s32.totalorder %s913_s1, %s549_s6  ;;  %p556_p9 = scmp.lt.u32.totalorder %s549_s6, %s549_s6 }
  0x33   : > { %s922_s27 = scalar_select %p815_p8, 1, 0 }
  0x34   : > { %p552_p12 = pnand %p550_p6, %p521_p5  ;;  %p558_p10 = scmp.lt.u32.totalorder %s549_s6, %s913_s1 }
  0x36   : > { %p553_p0 = pneg %p552_p12  ;;  %p559_p11 = por %p558_p10, %p556_p9 }
  0x38   : > { %p560_p1 = pnand %p559_p11, %p553_p0 }
  0x3a   : > { %563 = shalt.err (!%p560_p1)
}
  0x3b   : > { %s564_s17 = scalar_lea.vmem %s180_s3, 256  ;;  %s571_s22 = scalar_lea.vmem %s180_s3, 512 }
  0x3c   : > { %p565_p3 = scmp.ne.s32.totalorder %s180_s3, %s564_s17  ;;  %p572_p4 = scmp.lt.s32.totalorder %s180_s3, %s180_s3 }
  0x3d   : > { %p573_p8 = scmp.lt.s32.totalorder %s571_s22, %s564_s17 }
  0x3e   : > { %p567_p7 = pnand %p565_p3, %p521_p5 }
  0x3f   : > { %p574_p6 = por %p573_p8, %p572_p4 }
  0x40   : > { %p568_p13 = pneg %p567_p7 }
  0x42   : > { %p575_p12 = pnand %p574_p6, %p568_p13 }
  0x44   : > { %578 = shalt.err (!%p575_p12)
}
  0x45   : > { %433 = dma.hbm_to_vmem [thread:$0]  (!%p784_p2), %s913_s1, 256, %s180_s3, [#allocation6], %s689_s18, %s689_s18, %s690_s20  }
  0x46   : > { %p923_p0 = scmp.ne.s32.totalorder %s922_s27, 0 }
  0x47   : > { %s193_s4 = sand.u32 (!%p923_p0), 1, %s674_s13   ;;  %p924_p5 = scmp.ne.s32.totalorder (!%p923_p0), %s918_s21, 0 }
  0x48   : > { %191 = sbr.rel (%p923_p0) target bundleno = 123 (0x7b), region = 28  ;;  %s411_s5 = sshll.u32 (!%p923_p0), %s193_s4, 4 }
  0x49   : > { %s194_s6 = scalar_lea.sflag (!%p923_p0), [#allocation3], %s193_s4  ;;  %s197_s7 = scalar_lea.vmem (!%p923_p0), [#allocation2], %s411_s5 }
  0x4f   : > { %644 = dma.done.wait (%p924_p5), %s194_s6, 256  }
  0x50   : > { %646 = vsyncadd (%p924_p5), %s194_s6, 4294967040  ;;  %s203_s29 = scalar_lea.sflag [#allocation6], %s193_s4  ;;  %s206_s8 = scalar_lea.vmem [#allocation5], %s411_s5 }
  0x51   : > { %648 = dma.done.wait (%p924_p5), %s203_s29, 256  }
  0x52   : > { %650 = vsyncadd (%p924_p5), %s203_s29, 4294967040  ;;  %v245_v0 = vld [vmem:[%s197_s7] sm:$0xff]  ;;  %v246_v1 = vld [vmem:[%s197_s7 + $0x8] sm:$0xff]  ;;  %v271_v8 = vlaneseq  ;;  %s414_s18 = sshll.u32 %s678_s14, 4  ;;  %s229_s21 = sand.u32 1, %s662_s10  }
  0x53   : > { %v247_v2 = vld [vmem:[%s206_s8] sm:$0xff]  ;;  %v248_v3 = vld [vmem:[%s206_s8 + $0x8] sm:$0xff]  ;;  %v274_v13 = vstv %s414_s18  ;;  %s413_s20 = sshll.u32 %s229_s21, 3  ;;  %s416_s27 = sshll.u32 %s678_s14, 7 }
  0x54   : > { %v249_v4 = vsub.f32 %v245_v0, %v247_v2  ;;  %v250_v5 = vsub.f32 %v246_v1, %v248_v3  ;;  %v272_v11 = vshrl.u32 %v271_v8, 7  ;;  %s231_s3 = scalar_lea.vmem [#allocation7], %s413_s20  ;;  %s859_s22 = scalar_lea.hbm %s914_s2, %s416_s27 }
  0x55   : > { %s299_s28 = sshll.u32 %s231_s3, 4  ;;  %s286_s23 = scalar_lea.sflag [#allocation4], %s229_s21  ;;  %s861_s28 = int_to_ptr.vmem [resolvable:$true] %s299_s28 }
  0x56   : > { %v251_v6 = vmul.f32 %v249_v4, %v249_v4  ;;  %v252_v7 = vmul.f32 %v250_v5, %v250_v5  ;;  %v273_v12 = vadd.s32 8, %v272_v11  ;;  %v275_v14 = vadd.s32 %v274_v13, %v272_v11  ;;  %s579_s30 = scalar_lea.vmem %s861_s28, 128  ;;  %p925_p8 = scmp.ne.s32.totalorder %s919_s25, 0 }
  0x57   : > { %p580_p2 = scmp.ne.s32.totalorder %s861_s28, %s579_s30  ;;  %s692_s14 = smov [#allocation7]  }
  0x58   : > { %v253_v9 = vadd.f32 1e-06, %v251_v6  ;;  %v254_v10 = vadd.f32 1e-06, %v252_v7  ;;  %v276_v15 = vadd.s32 %v274_v13, %v273_v12  ;;  %vm277_vm4 = vcmp.lt.s32.totalorder %v275_v14, 16  ;;  %s583_s4 = sshll.u32 %s692_s14, 4  ;;  %s584_s4 = int_to_ptr.vmem [resolvable:$false] %s583_s4 }
  0x59   : > { %p581_p9 = pnand %p580_p2, %p925_p8  ;;  %s585_s5 = scalar_lea.vmem %s584_s4, 256 }
  0x5a   : > { %515 = vrsqrt.f32 %v253_v9  ;;  %vm257_vm0 = vcmp.eq.f32.partialorder %v253_v9, inf  ;;  %v260_v17 = vand.u32 2147483648, %v253_v9  ;;  %vm259_vm1 = vcmp.eq.f32.partialorder %v253_v9, 0.0  ;;  %p586_p11 = scmp.lt.s32.totalorder %s861_s28, %s584_s4  ;;  %p587_p1 = scmp.lt.s32.totalorder %s585_s5, %s579_s30 }
  0x5b   : > { %517 = vrsqrt.f32 %v254_v10  ;;  %vm264_vm2 = vcmp.eq.f32.partialorder %v254_v10, inf  ;;  %v267_v20 = vand.u32 2147483648, %v254_v10  ;;  %vm266_vm3 = vcmp.eq.f32.partialorder %v254_v10, 0.0  ;;  %p582_p10 = pneg %p581_p9 }
  0x5c   : > { %vm278_vm5 = vcmp.lt.s32.totalorder %v276_v15, 16  ;;  %p588_p3 = por %p587_p1, %p586_p11 }
  0x5e   : > { %p589_p7 = pnand %p588_p3, %p582_p10 }
  0x64   : > { %v516_v16 = vpop.eup %515 }
  0x65   : > { %v518_v18 = vpop.eup %517  ;;  %v256_v19 = vmul.f32 %v516_v16, %v253_v9 }
  0x66   : > { %v263_v21 = vmul.f32 %v518_v18, %v254_v10 }
  0x67   : > { %v258_v22 = vsel %vm257_vm0, %v253_v9, %v256_v19 }
  0x68   : > { %v261_v23 = vsel %vm259_vm1, %v260_v17, %v258_v22  ;;  %v265_v24 = vsel %vm264_vm2, %v254_v10, %v263_v21 }
  0x69   : > { %v268_v25 = vsel %vm266_vm3, %v267_v20, %v265_v24  ;;  %v279_v26 = vsel %vm277_vm4, %v261_v23, 0.0 }
  0x6a   : > { %v280_v27 = vsel %vm278_vm5, %v268_v25, 0.0 }
  0x6b   : > { %v282_v28 = vadd.f32 %v280_v27, %v279_v26 }
  0x6d   : > { %284 = vst [vmem:[%s231_s3] sm:$0xff] %v282_v28 }
  0x6e   : > { %592 = shalt.err (!%p589_p7)
}
  0x6f   : > { %s593_s6 = scalar_lea.hbm %s859_s22, 128  ;;  %s597_s8 = scalar_lea.hbm %s914_s2, 256 }
  0x70   : > { %p594_p13 = scmp.ne.s32.totalorder %s859_s22, %s593_s6  ;;  %p598_p12 = scmp.lt.u32.totalorder %s859_s22, %s914_s2 }
  0x71   : > { %p599_p0 = scmp.lt.u32.totalorder %s597_s8, %s593_s6  ;;  %p601_p2 = scmp.lt.u32.totalorder %s593_s6, %s859_s22 }
  0x72   : > { %p595_p4 = pnand %p594_p13, %p925_p8 }
  0x73   : > { %p600_p5 = por %p599_p0, %p598_p12 }
  0x74   : > { %p596_p6 = pneg %p595_p4 }
  0x75   : > { %p602_p9 = por %p601_p2, %p600_p5 }
  0x77   : > { %p603_p10 = pnand %p602_p9, %p596_p6 }
  0x79   : > { %606 = shalt.err (!%p603_p10)
}
  0x7a   : > { %425 = dma.vmem_to_hbm [thread:$0]  (%p925_p8), %s861_s28, 128, %s859_s22, %s286_s23  }
  0x7b PF: > { %s311_s20 = sand.u32 1, %s658_s9   ;;  %p926_p11 = scmp.ne.s32.totalorder %s920_s26, 0 }
  0x7c   : > { %p927_p1 = scmp.ge.s32.totalorder %s686_s16, 2  ;;  %s312_s27 = scalar_lea.sflag [#allocation4], %s311_s20 }
  0x7e   : > { %p435_p3 = pnand %p927_p1, %p926_p11 }
  0x80   : > { %652 = dma.done.wait (!%p435_p3), %s312_s27, 128  }
  0x81   : > { %654 = vsyncadd (!%p435_p3), %s312_s27, 4294967168  ;;  %s21_s16 = sadd.s32 1, %s686_s16   ;;  %s928_s9 = smov %s662_s10 }
  0x82   : > { %p18_p7 = scmp.ge.s32.totalorder %s21_s16, 4   ;;  %s929_s10 = smov %s666_s11 }
  0x83   : > { %s930_s11 = smov %s766_s24  ;;  %s931_s12 = smov %s674_s13 }
  0x84   : > { %s902_s13 = smov 0   ;;  %s932_s14 = smov %s682_s15 }
  0x85   : > { %s933_s15 = smov %s935_s19  ;;  %20 = sbr.rel (!%p18_p7) target bundleno = 9 (0x9), region = 90 }
  0x8c   :  { %317 = vsyncpa [#allocation3], 1 }
  0x8d   :  { %319 = vsyncpa [#allocation3 + $0x1], 1 }
  0x8e   :  { %320 = vsyncpa [#allocation6], 1 }
  0x8f   :  { %322 = vsyncpa [#allocation6 + $0x1], 1 }
  0x90   :  { %323 = vsyncpa [#allocation4], 1 }
  0x91   :  { %325 = vsyncpa [#allocation4 + $0x1], 1 }

</bundles_post_ra>
